<compile_context>
chip_gen: v7x
topology: tpu7x:2x2x1
jax: 0.10.0
libtpu: 0.0.40
codegen_flags: <defaults>
</compile_context>

<pallas_src>
from functools import partial

import jax
import jax.numpy as jnp
from jax.experimental import pallas as pl
from jax.experimental.pallas import tpu as pltpu


# ---------------------------------------------------------------------------
# Kernel
# ---------------------------------------------------------------------------
def _predictor_deep_kernel(norm_eps, norm_feature,
                           x_ref, w1_ref, b1_ref, w2_ref, o_ref):
    # In-kernel cast to bf16 for the MXU (no-op if x already arrives as bf16);
    # avoids a separate wrapper-side cast pass over x in HBM.
    x = x_ref[...]
    if x.dtype != jnp.bfloat16:
        x = x.astype(jnp.bfloat16)

    # ---- fc1 with bias + eval-BN pre-folded into (w1', b') ----
    h = jnp.dot(x, w1_ref[...], preferred_element_type=jnp.float32)
    h = h + b1_ref[...]                       # (1, hidden) f32 broadcast over batch

    # ---- ReLU (Dropout(p=0.5) is identity in eval mode) ----
    h = jnp.maximum(h, jnp.float32(0.0))

    if norm_feature:
        # F.normalize: x / max(||x||, eps)  ==  x * rsqrt(max(||x||^2, eps^2))
        sq = jnp.sum(h * h, axis=-1, keepdims=True)
        inv = jax.lax.rsqrt(jnp.maximum(sq, jnp.float32(norm_eps * norm_eps)))
        h = h * inv

    # ---- fc2 (no bias; 1/temp already folded into w2 when norm_feature) ----
    out = jnp.dot(h.astype(w2_ref.dtype), w2_ref[...],
                  preferred_element_type=jnp.float32)
    o_ref[...] = out.astype(o_ref.dtype)


# ---------------------------------------------------------------------------
# Parameter init (mirrors the PyTorch module's __init__) and one-time folding
# ---------------------------------------------------------------------------
def init_params(key, inc, num_class):
    """Raw (PyTorch-layout-equivalent) parameters. Weights stored as (in, out)."""
    hidden = inc // 2
    k1, k2 = jax.random.split(key)

    # fc1: Linear(inc, hidden), xavier_normal_ weight, zero bias.
    std1 = (2.0 / (inc + hidden)) ** 0.5
    w1 = jax.random.normal(k1, (inc, hidden), jnp.float32) * std1
    b1 = jnp.zeros((hidden,), jnp.float32)

    # BatchNorm1d(hidden): PyTorch defaults (init_weights only applied to fc1).
    gamma = jnp.ones((hidden,), jnp.float32)
    beta = jnp.zeros((hidden,), jnp.float32)
    mean = jnp.zeros((hidden,), jnp.float32)
    var = jnp.ones((hidden,), jnp.float32)

    # fc2: Linear(hidden, num_class, bias=False), xavier_normal_.
    std2 = (2.0 / (hidden + num_class)) ** 0.5
    w2 = jax.random.normal(k2, (hidden, num_class), jnp.float32) * std2

    return dict(w1=w1, b1=b1, gamma=gamma, beta=beta, mean=mean, var=var, w2=w2)


def prepare_params(raw, *, temp=0.05, norm_feature=True, bn_eps=1e-5, lane=128):
    """One-time host-side fold: bias + eval-BN into fc1, 1/temp into fc2,
    bf16 cast, class-dim padding to a lane multiple."""
    w1, b1 = raw["w1"], raw["b1"]
    gamma, beta, mean, var = raw["gamma"], raw["beta"], raw["mean"], raw["var"]
    w2 = raw["w2"]
    inc, hidden = w1.shape
    num_class = w2.shape[1]

    inv_std = 1.0 / jnp.sqrt(var + bn_eps)
    scale = gamma * inv_std                                   # (hidden,)
    w1_f = (w1 * scale[None, :]).astype(jnp.bfloat16)         # fold BN scale into columns
    b1_f = ((b1 - mean) * scale + beta).astype(jnp.float32).reshape(1, hidden)

    # Fold the temperature into fc2 when norm_feature (out = fc2(h)/temp).
    w2_eff = w2 / temp if norm_feature else w2

    # Pad class dim up to a multiple of 128 (lane-dense stores, full MXU columns).
    nc_pad = max(lane, ((num_class + lane - 1) // lane) * lane)
    w2_p = jnp.zeros((hidden, nc_pad), jnp.float32).at[:, :num_class].set(w2_eff)
    w2_p = w2_p.astype(jnp.bfloat16)

    return dict(w1=w1_f, b1=b1_f, w2=w2_p, num_class=num_class,
                norm_feature=bool(norm_feature))


# ---------------------------------------------------------------------------
# Tiling / VMEM sizing helpers
# ---------------------------------------------------------------------------
def _round_up(n, m):
    return ((n + m - 1) // m) * m


def _vmem_cap_bytes():
    """~0.85x of physical VMEM per core; conservative 64 MiB fallback (v7x)."""
    phys = 64 * 1024 * 1024
    try:
        info = pltpu.get_tpu_info()
        phys = int(getattr(info, "vmem_capacity_bytes", phys)) or phys
    except Exception:
        pass
    return int(phys * 0.85)


def _default_tb_target():
    """256 on 64 MiB-VMEM chips (v7x), 512 on 128 MiB chips (v5e/v6e)."""
    try:
        info = pltpu.get_tpu_info()
        phys = int(getattr(info, "vmem_capacity_bytes", 0))
        if phys and phys <= 96 * 1024 * 1024:
            return 256
        return 512
    except Exception:
        return 256


def _vmem_budget(tb, inc, hidden, nc_pad, x_isz, out_isz, weight_bufs=2):
    return (2 * tb * inc * x_isz                 # x tiles (double-buffered)
            + 2 * tb * nc_pad * out_isz          # out tiles (double-buffered)
            + weight_bufs * (inc * hidden * 2    # w1 (bf16)
                             + hidden * 4        # folded bias (f32)
                             + hidden * nc_pad * 2)   # w2 (bf16)
            + tb * (inc * 2 + hidden * 4 + nc_pad * 4))  # in-kernel temporaries


def _select_tb(N, inc, hidden, nc_pad, x_isz, out_isz, vmem_cap, requested=None):
    n16 = max(16, _round_up(N, 16))           # bf16 sublane-packing granularity
    if requested is not None:
        tb = max(16, _round_up(int(requested), 16))
    else:
        tb = _default_tb_target()
        # Shrink until the conservative budget (weights counted twice) fits.
        while tb > 16 and _vmem_budget(tb, inc, hidden, nc_pad,
                                       x_isz, out_isz, 2) > 0.9 * vmem_cap:
            tb //= 2
        tb = max(16, tb)
    # Small-batch adaptivity: never pad a tiny batch up to a huge tile.
    tb = min(tb, n16)
    # Keep >= 2 grid steps (v7x megacore sharding) once the batch is big enough.
    if n16 >= 256 and pl.cdiv(n16, tb) < 2:
        tb = max(16, _round_up((n16 + 1) // 2, 16))
    return tb


# ---------------------------------------------------------------------------
# Wrapper
# ---------------------------------------------------------------------------
def predictor_deep_forward(x, params, *, tb=None, out_dtype=jnp.float32,
                           single_buffer_weights=True):
    """x: (N, inc) float32 or bfloat16. params: output of prepare_params()."""
    N, inc = x.shape
    hidden = params["w1"].shape[1]
    nc_pad = params["w2"].shape[1]
    num_class = params["num_class"]
    norm_feature = params["norm_feature"]

    x_isz = jnp.dtype(x.dtype).itemsize
    out_isz = jnp.dtype(out_dtype).itemsize
    vmem_cap = _vmem_cap_bytes()
    tb = _select_tb(N, inc, hidden, nc_pad, x_isz, out_isz, vmem_cap, tb)

    # Pad batch only when needed (skip the extra HBM pass for aligned N).
    n_pad = pl.cdiv(N, tb) * tb
    x_p = x if n_pad == N else jnp.zeros((n_pad, inc), x.dtype).at[:N].set(x)
    grid = (n_pad // tb,)

    budget = _vmem_budget(tb, inc, hidden, nc_pad, x_isz, out_isz, 2)
    vmem_limit = int(min(max(int(budget * 1.25), 16 * 1024 * 1024), vmem_cap))

    try:
        cost = pl.CostEstimate(
            flops=2 * n_pad * (inc * hidden + hidden * nc_pad),
            transcendentals=n_pad if norm_feature else 0,
            bytes_accessed=(n_pad * inc * x_isz + n_pad * nc_pad * out_isz
                            + inc * hidden * 2 + hidden * nc_pad * 2 + hidden * 4))
    except Exception:
        cost = None

    kernel = partial(_predictor_deep_kernel, 1e-12, bool(norm_feature))

    def call(weight_mode):
        w_kw = {} if weight_mode is None else dict(pipeline_mode=weight_mode)
        extra = {} if cost is None else dict(cost_estimate=cost)
        return pl.pallas_call(
            kernel,
            out_shape=jax.ShapeDtypeStruct((n_pad, nc_pad), out_dtype),
            grid=grid,
            in_specs=[
                pl.BlockSpec((tb, inc), lambda i: (i, 0)),                  # x: batch-tiled
                pl.BlockSpec((inc, hidden), lambda i: (0, 0), **w_kw),      # w1: resident
                pl.BlockSpec((1, hidden), lambda i: (0, 0), **w_kw),        # folded bias
                pl.BlockSpec((hidden, nc_pad), lambda i: (0, 0), **w_kw),   # w2: resident
            ],
            out_specs=pl.BlockSpec((tb, nc_pad), lambda i: (i, 0)),
            compiler_params=pltpu.CompilerParams(
                dimension_semantics=("parallel",),   # shard batch grid across TCs
                vmem_limit_bytes=vmem_limit),
            **extra,
        )(x_p, params["w1"], params["b1"], params["w2"])

    buffered = getattr(pl, "Buffered", None)
    if single_buffer_weights and buffered is not None:
        try:
            out = call(buffered(1))      # grid-invariant weights: single-buffered
        except Exception:
            out = call(None)             # fallback: default (double-buffered) specs
    else:
        out = call(None)

    return out[:N, :num_class]


# ---------------------------------------------------------------------------
# Pure-JAX f32 reference (exact eval-mode PyTorch semantics)
# ---------------------------------------------------------------------------
def reference_forward(x, raw, *, temp=0.05, norm_feature=True):
    h = x @ raw["w1"] + raw["b1"]
    h = (h - raw["mean"]) / jnp.sqrt(raw["var"] + 1e-5) * raw["gamma"] + raw["beta"]
    h = jnp.maximum(h, 0.0)
    if norm_feature:
        nrm = jnp.sqrt(jnp.sum(h * h, axis=-1, keepdims=True))
        h = h / jnp.maximum(nrm, 1e-12)
        return (h @ raw["w2"]) / temp
    return h @ raw["w2"]


if __name__ == "__main__":
    # Small shapes consistent with the module (inc must be even).
    N, INC, NUM_CLASS = 8, 256, 64
    TEMP = 0.05

    key = jax.random.PRNGKey(0)
    kx, kp, kx2 = jax.random.split(key, 3)
    x = jax.random.normal(kx, (N, INC), jnp.float32)
    raw = init_params(kp, INC, NUM_CLASS)

    # --- Case 1: norm_feature=True (temperature folded into fc2), tiny batch ---
    params = prepare_params(raw, temp=TEMP, norm_feature=True)
    out = jax.block_until_ready(predictor_deep_forward(x, params))
    ref = reference_forward(x, raw, temp=TEMP, norm_feature=True)
    assert out.shape == (N, NUM_CLASS)
    # bf16-in / f32-accumulate matmuls -> bf16-appropriate tolerances vs f32 ref.
    assert jnp.allclose(out, ref, atol=5e-2, rtol=2e-2), "mismatch vs reference (norm)"

    # --- Case 2: norm_feature=False, ragged batch (exercises padding + >=2 grid steps) ---
    N2 = 300
    x2 = jax.random.normal(kx2, (N2, INC), jnp.float32)
    params_nf = prepare_params(raw, temp=TEMP, norm_feature=False)
    out2 = jax.block_until_ready(predictor_deep_forward(x2, params_nf))
    ref2 = reference_forward(x2, raw, temp=TEMP, norm_feature=False)
    assert out2.shape == (N2, NUM_CLASS)
    assert jnp.allclose(out2, ref2, atol=5e-2, rtol=2e-2), "mismatch vs reference (no norm)"

    print("KERNEL_OK")
</pallas_src>

<mosaic_0001>
module attributes {stable_mosaic.version = 11 : i64} {
  func.func @_predictor_deep_kernel(%arg0: i32, %arg1: memref<16x256xf32, #tpu.memory_space<vmem>>, %arg2: memref<256x128xbf16, #tpu.memory_space<vmem>>, %arg3: memref<1x128xf32, #tpu.memory_space<vmem>>, %arg4: memref<128x128xbf16, #tpu.memory_space<vmem>>, %arg5: memref<16x128xf32, #tpu.memory_space<vmem>>) attributes {dimension_semantics = [#tpu.dimension_semantics<parallel>], iteration_bounds = array<i64: 1>, scalar_prefetch = 0 : i64, scratch_operands = 0 : i64, tpu.core_type = #tpu.core_type<tc>, window_params = [{transform_indices = @transform_0, window_bounds = array<i64: 16, 256>}, {pipeline_mode = #tpu.pipeline_mode<synchronous>, transform_indices = @transform_1, window_bounds = array<i64: 256, 128>}, {pipeline_mode = #tpu.pipeline_mode<synchronous>, transform_indices = @transform_2, window_bounds = array<i64: 1, 128>}, {pipeline_mode = #tpu.pipeline_mode<synchronous>, transform_indices = @transform_3, window_bounds = array<i64: 128, 128>}, {transform_indices = @transform_4, window_bounds = array<i64: 16, 128>}]} {
    %c0 = arith.constant 0 : index
    %c0_0 = arith.constant 0 : index
    %0 = vector.load %arg1[%c0, %c0_0] : memref<16x256xf32, #tpu.memory_space<vmem>>, vector<16x256xf32>
    %1 = arith.truncf %0 : vector<16x256xf32> to vector<16x256xbf16>
    %c0_1 = arith.constant 0 : index
    %c0_2 = arith.constant 0 : index
    %2 = vector.load %arg2[%c0_1, %c0_2] : memref<256x128xbf16, #tpu.memory_space<vmem>>, vector<256x128xbf16>
    %cst = arith.constant dense<0.000000e+00> : vector<16x128xf32>
    %3 = tpu.matmul %1, %2, %cst {dimension_numbers = #tpu.dot_dimension_numbers<[1], [0], [0], [1], [0, 0, 1, 1], [], []>} : vector<16x256xbf16>, vector<256x128xbf16>, vector<16x128xf32> -> vector<16x128xf32>
    %c0_3 = arith.constant 0 : index
    %c0_4 = arith.constant 0 : index
    %4 = vector.load %arg3[%c0_3, %c0_4] : memref<1x128xf32, #tpu.memory_space<vmem>>, vector<1x128xf32>
    %5 = vector.broadcast %4 : vector<1x128xf32> to vector<16x128xf32>
    %6 = arith.addf %3, %5 : vector<16x128xf32>
    %cst_5 = arith.constant 0.000000e+00 : f32
    %7 = vector.broadcast %cst_5 : f32 to vector<16x128xf32>
    %8 = arith.maximumf %6, %7 : vector<16x128xf32>
    %9 = arith.mulf %8, %8 : vector<16x128xf32>
    %cst_6 = arith.constant dense<0.000000e+00> : vector<16xf32>
    %10 = vector.multi_reduction <add>, %9, %cst_6 [1] : vector<16x128xf32> to vector<16xf32>
    %11 = vector.shape_cast %10 : vector<16xf32> to vector<16x1xf32>
    %cst_7 = arith.constant 1.000000e-24 : f32
    %12 = vector.broadcast %cst_7 : f32 to vector<16x1xf32>
    %13 = arith.maximumf %11, %12 : vector<16x1xf32>
    %14 = math.rsqrt %13 : vector<16x1xf32>
    %15 = vector.broadcast %14 : vector<16x1xf32> to vector<16x128xf32>
    %16 = arith.mulf %8, %15 : vector<16x128xf32>
    %17 = arith.truncf %16 : vector<16x128xf32> to vector<16x128xbf16>
    %c0_8 = arith.constant 0 : index
    %c0_9 = arith.constant 0 : index
    %18 = vector.load %arg4[%c0_8, %c0_9] : memref<128x128xbf16, #tpu.memory_space<vmem>>, vector<128x128xbf16>
    %cst_10 = arith.constant dense<0.000000e+00> : vector<16x128xf32>
    %19 = tpu.matmul %17, %18, %cst_10 {dimension_numbers = #tpu.dot_dimension_numbers<[1], [0], [0], [1], [0, 0, 1, 1], [], []>} : vector<16x128xbf16>, vector<128x128xbf16>, vector<16x128xf32> -> vector<16x128xf32>
    %c0_11 = arith.constant 0 : index
    %c0_12 = arith.constant 0 : index
    %20 = vector.load %arg5[%c0_11, %c0_12] : memref<16x128xf32, #tpu.memory_space<vmem>>, vector<16x128xf32>
    tpu.vector_store %arg5[%c0_11, %c0_12], %19 {strides = array<i32>} : memref<16x128xf32, #tpu.memory_space<vmem>>, vector<16x128xf32>,
    return
  }
  func.func @transform_0(%arg0: i32) -> (i32, i32) {
    %c0_i32 = arith.constant 0 : i32
    %c0_i32_0 = arith.constant 0 : i32
    return %arg0, %c0_i32 : i32, i32
  }
  func.func @transform_1(%arg0: i32) -> (i32, i32) {
    %c0_i32 = arith.constant 0 : i32
    %c0_i32_0 = arith.constant 0 : i32
    %c0_i32_1 = arith.constant 0 : i32
    return %c0_i32, %c0_i32_0 : i32, i32
  }
  func.func @transform_2(%arg0: i32) -> (i32, i32) {
    %c0_i32 = arith.constant 0 : i32
    %c0_i32_0 = arith.constant 0 : i32
    %c0_i32_1 = arith.constant 0 : i32
    return %c0_i32, %c0_i32_0 : i32, i32
  }
  func.func @transform_3(%arg0: i32) -> (i32, i32) {
    %c0_i32 = arith.constant 0 : i32
    %c0_i32_0 = arith.constant 0 : i32
    %c0_i32_1 = arith.constant 0 : i32
    return %c0_i32, %c0_i32_0 : i32, i32
  }
  func.func @transform_4(%arg0: i32) -> (i32, i32) {
    %c0_i32 = arith.constant 0 : i32
    %c0_i32_0 = arith.constant 0 : i32
    return %arg0, %c0_i32 : i32, i32
  }
}

module attributes {stable_mosaic.version = 11 : i64} {
  func.func @_predictor_deep_kernel(%arg0: i32, %arg1: memref<16x256xf32, #tpu.memory_space<vmem>>, %arg2: memref<256x128xbf16, #tpu.memory_space<vmem>>, %arg3: memref<1x128xf32, #tpu.memory_space<vmem>>, %arg4: memref<128x128xbf16, #tpu.memory_space<vmem>>, %arg5: memref<16x128xf32, #tpu.memory_space<vmem>>) attributes {dimension_semantics = [#tpu.dimension_semantics<parallel>], iteration_bounds = array<i64: 1>, scalar_prefetch = 0 : i64, scratch_operands = 0 : i64, tpu.core_type = #tpu.core_type<tc>, window_params = [{transform_indices = @transform_0, window_bounds = array<i64: 16, 256>}, {pipeline_mode = #tpu.pipeline_mode<synchronous>, transform_indices = @transform_1, window_bounds = array<i64: 256, 128>}, {pipeline_mode = #tpu.pipeline_mode<synchronous>, transform_indices = @transform_2, window_bounds = array<i64: 1, 128>}, {pipeline_mode = #tpu.pipeline_mode<synchronous>, transform_indices = @transform_3, window_bounds = array<i64: 128, 128>}, {transform_indices = @transform_4, window_bounds = array<i64: 16, 128>}]} {
    %c0 = arith.constant 0 : index
    %c0_0 = arith.constant 0 : index
    %0 = vector.load %arg1[%c0, %c0_0] : memref<16x256xf32, #tpu.memory_space<vmem>>, vector<16x256xf32>
    %1 = arith.truncf %0 : vector<16x256xf32> to vector<16x256xbf16>
    %c0_1 = arith.constant 0 : index
    %c0_2 = arith.constant 0 : index
    %2 = vector.load %arg2[%c0_1, %c0_2] : memref<256x128xbf16, #tpu.memory_space<vmem>>, vector<256x128xbf16>
    %cst = arith.constant dense<0.000000e+00> : vector<16x128xf32>
    %3 = tpu.matmul %1, %2, %cst {dimension_numbers = #tpu.dot_dimension_numbers<[1], [0], [0], [1], [0, 0, 1, 1], [], []>} : vector<16x256xbf16>, vector<256x128xbf16>, vector<16x128xf32> -> vector<16x128xf32>
    %c0_3 = arith.constant 0 : index
    %c0_4 = arith.constant 0 : index
    %4 = vector.load %arg3[%c0_3, %c0_4] : memref<1x128xf32, #tpu.memory_space<vmem>>, vector<1x128xf32>
    %5 = vector.broadcast %4 : vector<1x128xf32> to vector<16x128xf32>
    %6 = arith.addf %3, %5 : vector<16x128xf32>
    %cst_5 = arith.constant 0.000000e+00 : f32
    %7 = vector.broadcast %cst_5 : f32 to vector<16x128xf32>
    %8 = arith.maximumf %6, %7 : vector<16x128xf32>
    %9 = arith.mulf %8, %8 : vector<16x128xf32>
    %cst_6 = arith.constant dense<0.000000e+00> : vector<16xf32>
    %10 = vector.multi_reduction <add>, %9, %cst_6 [1] : vector<16x128xf32> to vector<16xf32>
    %11 = vector.shape_cast %10 : vector<16xf32> to vector<16x1xf32>
    %cst_7 = arith.constant 1.000000e-24 : f32
    %12 = vector.broadcast %cst_7 : f32 to vector<16x1xf32>
    %13 = arith.maximumf %11, %12 : vector<16x1xf32>
    %14 = math.rsqrt %13 : vector<16x1xf32>
    %15 = vector.broadcast %14 : vector<16x1xf32> to vector<16x128xf32>
    %16 = arith.mulf %8, %15 : vector<16x128xf32>
    %17 = arith.truncf %16 : vector<16x128xf32> to vector<16x128xbf16>
    %c0_8 = arith.constant 0 : index
    %c0_9 = arith.constant 0 : index
    %18 = vector.load %arg4[%c0_8, %c0_9] : memref<128x128xbf16, #tpu.memory_space<vmem>>, vector<128x128xbf16>
    %cst_10 = arith.constant dense<0.000000e+00> : vector<16x128xf32>
    %19 = tpu.matmul %17, %18, %cst_10 {dimension_numbers = #tpu.dot_dimension_numbers<[1], [0], [0], [1], [0, 0, 1, 1], [], []>} : vector<16x128xbf16>, vector<128x128xbf16>, vector<16x128xf32> -> vector<16x128xf32>
    %c0_11 = arith.constant 0 : index
    %c0_12 = arith.constant 0 : index
    %20 = vector.load %arg5[%c0_11, %c0_12] : memref<16x128xf32, #tpu.memory_space<vmem>>, vector<16x128xf32>
    tpu.vector_store %arg5[%c0_11, %c0_12], %19 {strides = array<i32>} : memref<16x128xf32, #tpu.memory_space<vmem>>, vector<16x128xf32>,
    return
  }
  func.func @transform_0(%arg0: i32) -> (i32, i32) {
    %c0_i32 = arith.constant 0 : i32
    %c0_i32_0 = arith.constant 0 : i32
    return %arg0, %c0_i32 : i32, i32
  }
  func.func @transform_1(%arg0: i32) -> (i32, i32) {
    %c0_i32 = arith.constant 0 : i32
    %c0_i32_0 = arith.constant 0 : i32
    %c0_i32_1 = arith.constant 0 : i32
    return %c0_i32, %c0_i32_0 : i32, i32
  }
  func.func @transform_2(%arg0: i32) -> (i32, i32) {
    %c0_i32 = arith.constant 0 : i32
    %c0_i32_0 = arith.constant 0 : i32
    %c0_i32_1 = arith.constant 0 : i32
    return %c0_i32, %c0_i32_0 : i32, i32
  }
  func.func @transform_3(%arg0: i32) -> (i32, i32) {
    %c0_i32 = arith.constant 0 : i32
    %c0_i32_0 = arith.constant 0 : i32
    %c0_i32_1 = arith.constant 0 : i32
    return %c0_i32, %c0_i32_0 : i32, i32
  }
  func.func @transform_4(%arg0: i32) -> (i32, i32) {
    %c0_i32 = arith.constant 0 : i32
    %c0_i32_0 = arith.constant 0 : i32
    return %arg0, %c0_i32 : i32, i32
  }
}

</mosaic_0001>

<bundles_post_ra>
// kernel: tpu_custom_call.1
= control target key start
LH: loop header
LB: loop body
LE: loop exit
PB: predicated region body
PF: predicated region fallthrough
CT: control target
= control target key end

     0   :  { %9 = vsyncpa [#allocation3], 0  ;;  %s686_s0 = inlined_call_operand.hbm [shape: f32[16,256], index: 0, kind: input, shape index: {}]   ;;  %s687_s1 = inlined_call_operand.hbm [shape: bf16[256,128], index: 1, kind: input, shape index: {}]   ;;  %s688_s2 = inlined_call_operand.vmem [shape: f32[1,128], index: 2, kind: input, shape index: {}]   ;;  %s689_s3 = inlined_call_operand.hbm [shape: bf16[128,128], index: 3, kind: input, shape index: {}]   ;;  %s690_s4 = inlined_call_operand.hbm [shape: f32[16,128], index: 4, kind: output, shape index: {}]  }
   0x1   :  { %10 = vsyncpa [#allocation6], 0 }
   0x2   :  { %11 = vsyncpa [#allocation4], 0  ;;  %s592_s15 = smov [#allocation5]   ;;  %s498_s19 = scalar_lea.hbm %s687_s1, 2048 }
   0x3   :  { %s29_s16 = sshll.u32 %s592_s15, 4  ;;  %p499_p0 = scmp.ne.s32.totalorder %s687_s1, %s498_s19  ;;  %s30_s16 = int_to_ptr.vmem [resolvable:$true] %s29_s16 }
   0x4   :  { %p502_p1 = scmp.lt.u32.totalorder %s498_s19, %s687_s1 }
   0x6   :  { %p504_p2 = pnand %p502_p1, %p499_p0 }
   0x8   :  { %507 = shalt.err (!%p504_p2)
}
   0x9   :  { %s508_s24 = scalar_lea.vmem %s30_s16, 2048  ;;  %p513_p4 = scmp.lt.s32.totalorder %s30_s16, %s30_s16 }
   0xa   :  { %p509_p3 = scmp.ne.s32.totalorder %s30_s16, %s508_s24  ;;  %p514_p5 = scmp.lt.s32.totalorder %s508_s24, %s508_s24 }
   0xc   :  { %p515_p6 = por %p514_p5, %p513_p4 }
   0xe   :  { %p516_p7 = pnand %p515_p6, %p509_p3 }
  0x10   :  { %519 = shalt.err (!%p516_p7)
}
  0x11   :  { %s593_s25 = smov 64   ;;  %s594_s26 = smov 4  }
  0x12   :  { %35 = dma.hbm_to_vmem [thread:$0]  %s687_s1, 2048, %s30_s16, [#allocation6], %s593_s25, %s593_s25, %s594_s26  }
  0x13   :  { %s595_s29 = smov [#allocation2]   ;;  %s520_s7 = scalar_lea.hbm %s686_s0, 512 }
  0x14   :  { %s17_s30 = sshll.u32 %s595_s29, 4  ;;  %p521_p8 = scmp.ne.s32.totalorder %s686_s0, %s520_s7  ;;  %s18_s30 = int_to_ptr.vmem [resolvable:$true] %s17_s30 }
  0x15   :  { %p524_p9 = scmp.lt.u32.totalorder %s520_s7, %s686_s0 }
  0x17   :  { %p526_p10 = pnand %p524_p9, %p521_p8 }
  0x19   :  { %529 = shalt.err (!%p526_p10)
}
  0x1a   :  { %s530_s12 = scalar_lea.vmem %s18_s30, 512  ;;  %p535_p12 = scmp.lt.s32.totalorder %s18_s30, %s18_s30 }
  0x1b   :  { %p531_p11 = scmp.ne.s32.totalorder %s18_s30, %s530_s12  ;;  %p536_p13 = scmp.lt.s32.totalorder %s530_s12, %s530_s12 }
  0x1d   :  { %p537_p0 = por %p536_p13, %p535_p12 }
  0x1f   :  { %p538_p1 = pnand %p537_p0, %p531_p11 }
  0x21   :  { %541 = shalt.err (!%p538_p1)
}
  0x22   :  { %s596_s1 = smov 256   ;;  %s597_s13 = smov 16  }
  0x23   :  { %23 = dma.hbm_to_vmem [thread:$0]  %s686_s0, 512, %s18_s30, [#allocation3], %s596_s1, %s596_s1, %s597_s13  }
  0x24   :  { %s598_s16 = smov [#allocation7]   ;;  %s542_s20 = scalar_lea.hbm %s689_s3, 1024 }
  0x25   :  { %s43_s17 = sshll.u32 %s598_s16, 4  ;;  %p543_p2 = scmp.ne.s32.totalorder %s689_s3, %s542_s20  ;;  %s44_s17 = int_to_ptr.vmem [resolvable:$true] %s43_s17 }
  0x26   :  { %p546_p3 = scmp.lt.u32.totalorder %s542_s20, %s689_s3 }
  0x28   :  { %p548_p4 = pnand %p546_p3, %p543_p2 }
  0x2a   :  { %551 = shalt.err (!%p548_p4)
}
  0x2b   :  { %s552_s27 = scalar_lea.vmem %s44_s17, 1024  ;;  %p557_p6 = scmp.lt.s32.totalorder %s44_s17, %s44_s17 }
  0x2c   :  { %p553_p5 = scmp.ne.s32.totalorder %s44_s17, %s552_s27  ;;  %p558_p7 = scmp.lt.s32.totalorder %s552_s27, %s552_s27 }
  0x2e   :  { %p559_p8 = por %p558_p7, %p557_p6 }
  0x30   :  { %p560_p9 = pnand %p559_p8, %p553_p5 }
  0x32   :  { %563 = shalt.err (!%p560_p9)
}
  0x33   :  { %49 = dma.hbm_to_vmem [thread:$0]  %s689_s3, 1024, %s44_s17, [#allocation6], %s593_s25, %s593_s25, %s594_s26  }
  0x34   :  { %586 = dma.done.wait [#allocation3], 512  }
  0x35   :  { %587 = vsyncadd [#allocation3], 4294966784 }
  0x36   :  { %588 = dma.done.wait [#allocation6], 3072  }
  0x37   :  { %589 = vsyncadd [#allocation6], 4294964224  ;;  %v470_v0 = vld [vmem:[#allocation5 + $0x40] sm:$0xff]   ;;  %v472_v2 = vld [vmem:[#allocation5 + $0x48] sm:$0xff]   ;;  %v599_v23 = vmov 0.0   ;;  %vm600_vm0 = vmmov 0  }
  0x38   :  { %v471_v1 = vld [vmem:[#allocation5] sm:$0xff]   ;;  %407 = vmatprep.subr.bf16.mxu0 %v470_v0  ;;  %v473_v3 = vld [vmem:[#allocation5 + $0x8] sm:$0xff]   ;;  %v474_v4 = vld [vmem:[#allocation5 + $0x50] sm:$0xff]   ;;  %438 = vmatprep.subr.bf16.mxu1 %v599_v23 }
  0x39   :  { %408 = vmatpush3.bf16.msra.mxu0 %v471_v1  ;;  %v475_v5 = vld [vmem:[#allocation5 + $0x10] sm:$0xff]   ;;  %v476_v6 = vld [vmem:[#allocation5 + $0x58] sm:$0xff]   ;;  %v478_v8 = vld [vmem:[#allocation5 + $0x60] sm:$0xff]   ;;  %454 = vmatprep.mubr.msk.bf16.mxu1 %vm600_vm0, %v599_v23 }
  0x3a   :  { %409 = vmatprep.subr.bf16.mxu0 %v472_v2  ;;  %v477_v7 = vld [vmem:[#allocation5 + $0x18] sm:$0xff]   ;;  %v479_v9 = vld [vmem:[#allocation5 + $0x20] sm:$0xff]   ;;  %v480_v10 = vld [vmem:[#allocation5 + $0x68] sm:$0xff]  }
  0x3b   :  { %v61_v11 = vld [vmem:[#allocation2 + $0x8] sm:$0xff]  ;;  %v63_v12 = vld [vmem:[#allocation2 + $0x18] sm:$0xff]  ;;  %v482_v15 = vld [vmem:[#allocation5 + $0x70] sm:$0xff]  }
  0x3c   :  { %v481_v13 = vld [vmem:[#allocation5 + $0x28] sm:$0xff]   ;;  %v65_v14 = vpack.c.bf16 %v63_v12, %v61_v11  ;;  %v483_v16 = vld [vmem:[#allocation5 + $0x30] sm:$0xff]   ;;  %v484_v17 = vld [vmem:[#allocation5 + $0x78] sm:$0xff]  }
  0x3d   :  { %410 = vmatpush3.bf16.msra.mxu0 %v473_v3  ;;  %v485_v18 = vld [vmem:[#allocation5 + $0x38] sm:$0xff]   ;;  %v60_v19 = vld [vmem:[#allocation2] sm:$0xff]  ;;  %v62_v20 = vld [vmem:[#allocation2 + $0x10] sm:$0xff] }
  0x3e   :  { %411 = vmatprep.subr.bf16.mxu0 %v474_v4  ;;  %233 = vmatprep.mubr.bf16.mxu0 %v65_v14  ;;  %v64_v21 = vpack.c.bf16 %v62_v20, %v60_v19  ;;  %v486_v22 = vld [vmem:[#allocation7] sm:$0xff]   ;;  %v487_v24 = vld [vmem:[#allocation7 + $0x8] sm:$0xff]   ;;  %v488_v25 = vld [vmem:[#allocation7 + $0x10] sm:$0xff]  }
  0x3f   :  { %439 = vmatpush3.bf16.msra.mxu1 %v486_v22  ;;  %v382_v28 = vld [vmem:[%s688_s2] ss:$0 sm:$0xff]  ;;  %v489_v39 = vld [vmem:[#allocation7 + $0x18] sm:$0xff]   ;;  %v491_v41 = vld [vmem:[#allocation7 + $0x28] sm:$0xff]   ;;  %s601_s2 = smov [#allocation8]  }
  0x40   :  { %440 = vmatprep.subr.bf16.mxu1 %v599_v23  ;;  %v490_v40 = vld [vmem:[#allocation7 + $0x20] sm:$0xff]   ;;  %v492_v42 = vld [vmem:[#allocation7 + $0x30] sm:$0xff]   ;;  %v493_v43 = vld [vmem:[#allocation7 + $0x38] sm:$0xff]   ;;  %s369_s26 = sshll.u32 %s601_s2, 4  ;;  %s370_s26 = int_to_ptr.vmem [resolvable:$true] %s369_s26 }
  0x41   :  { %412 = vmatpush3.bf16.msra.mxu0 %v475_v5  ;;  %s564_s29 = scalar_lea.vmem %s370_s26, 256  ;;  %p569_p11 = scmp.lt.s32.totalorder %s370_s26, %s370_s26 }
  0x42   :  { %413 = vmatprep.subr.bf16.mxu0 %v476_v6  ;;  %p565_p10 = scmp.ne.s32.totalorder %s370_s26, %s564_s29  ;;  %p570_p12 = scmp.lt.s32.totalorder %s564_s29, %s564_s29 }
  0x43   :  { %441 = vmatpush3.bf16.msra.mxu1 %v487_v24 }
  0x44   :  { %442 = vmatprep.subr.bf16.mxu1 %v599_v23  ;;  %p571_p13 = por %p570_p12, %p569_p11 }
  0x45   :  { %414 = vmatpush3.bf16.msra.mxu0 %v477_v7 }
  0x46   :  { %415 = vmatprep.subr.bf16.mxu0 %v478_v8  ;;  %p572_p0 = pnand %p571_p13, %p565_p10 }
  0x47   :  { %443 = vmatpush3.bf16.msra.mxu1 %v488_v25 }
  0x48   :  { %444 = vmatprep.subr.bf16.mxu1 %v599_v23 }
  0x49   :  { %416 = vmatpush3.bf16.msra.mxu0 %v479_v9 }
  0x4a   :  { %417 = vmatprep.subr.bf16.mxu0 %v480_v10 }
  0x4b   :  { %445 = vmatpush3.bf16.msra.mxu1 %v489_v39 }
  0x4c   :  { %446 = vmatprep.subr.bf16.mxu1 %v599_v23 }
  0x4d   :  { %418 = vmatpush3.bf16.msra.mxu0 %v481_v13 }
  0x4e   :  { %419 = vmatprep.subr.bf16.mxu0 %v482_v15 }
  0x4f   :  { %447 = vmatpush3.bf16.msra.mxu1 %v490_v40 }
  0x50   :  { %448 = vmatprep.subr.bf16.mxu1 %v599_v23 }
  0x51   :  { %420 = vmatpush3.bf16.msra.mxu0 %v483_v16 }
  0x52   :  { %421 = vmatprep.subr.bf16.mxu0 %v484_v17 }
  0x53   :  { %449 = vmatpush3.bf16.msra.mxu1 %v491_v41 }
  0x54   :  { %450 = vmatprep.subr.bf16.mxu1 %v599_v23 }
  0x55   :  { %422 = vmatpush3.bf16.msra.mxu0 %v485_v18 }
  0x57   :  { %451 = vmatpush3.bf16.msra.mxu1 %v492_v42 }
  0x58   :  { %234 = vmatmul.mubr.bf16.vlgmr.msra.gmra.mrb[0].mxu0 %v64_v21  ;;  %452 = vmatprep.subr.bf16.mxu1 %v599_v23 }
  0x5b   :  { %453 = vmatpush3.bf16.msra.mxu1 %v493_v43 }
 0x12b   :  { %v423_v26 = vpop.f32.mrb[0].mxu0 }
 0x12c   :  { %v424_v27 = vpop.f32.mrb[1].mxu0 }
 0x12d   :  { %v425_v29 = vadd.f32 %v424_v27, %v423_v26  ;;  %v426_v30 = vpop.f32.mrb[2].mxu0 }
 0x12e   :  { %v427_v31 = vpop.f32.mrb[3].mxu0 }
 0x12f   :  { %v428_v32 = vadd.f32 %v427_v31, %v426_v30  ;;  %v236_v33 = vadd.f32 %v425_v29, %v382_v28 }
 0x131   :  { %v239_v34 = vadd.f32 %v428_v32, %v382_v28  ;;  %v242_v35 = vmax.f32 %v236_v33, 0.0 }
 0x133   :  { %v243_v36 = vmax.f32 %v239_v34, 0.0  ;;  %v244_v37 = vmul.f32 %v242_v35, %v242_v35 }
 0x135   :  { %246 = vadd.xlane.f32.xlu0 %v244_v37  ;;  %v245_v38 = vmul.f32 %v243_v36, %v243_v36 }
 0x139   :  { %248 = vadd.xlane.f32.xlu0 %v245_v38 }
 0x1c2   :  { %v247_v44 = vpop.xlane.xlu0 %246 }
 0x1c3   :  { %v250_v45 = vmax.f32 %v247_v44, 1e-24 }
 0x1c5   :  { %494 = vrsqrt.f32 %v250_v45 }
 0x1c6   :  { %v249_v46 = vpop.xlane.xlu0 %248 }
 0x1c7   :  { %v251_v47 = vmax.f32 %v249_v46, 1e-24 }
 0x1c9   :  { %496 = vrsqrt.f32 %v251_v47 }
 0x1cf   :  { %v495_v48 = vpop.eup %494 }
 0x1d0   :  { %v254_v50 = vmul.f32 %v495_v48, %v242_v35 }
 0x1d3   :  { %v497_v49 = vpop.eup %496 }
 0x1d4   :  { %v255_v51 = vmul.f32 %v497_v49, %v243_v36 }
 0x1d6   :  { %v256_v52 = vpack.c.bf16 %v255_v51, %v254_v50 }
 0x1d8   :  { %455 = vmatmul.mubr.bf16.vlgmr.msra.gmra.mrb[0].mxu1 %v256_v52 }
 0x2ab   :  { %v355_v53 = vpop.f32.mrb[0].mxu1 }
 0x2ac   :  { %362 = vst [vmem:[#allocation8] sm:$0xff] %v355_v53  ;;  %v456_v54 = vpop.f32.mrb[1].mxu1 }
 0x2ad   :  { %v358_v55 = vpop.f32.mrb[2].mxu1 }
 0x2ae   :  { %363 = vst [vmem:[#allocation8 + $0x8] sm:$0xff] %v358_v55  ;;  %v457_v56 = vpop.f32.mrb[3].mxu1 }
 0x2af   :  { %575 = shalt.err (!%p572_p0)
}
 0x2b0   :  { %s576_s6 = scalar_lea.hbm %s690_s4, 256 }
 0x2b1   :  { %p577_p1 = scmp.ne.s32.totalorder %s690_s4, %s576_s6  ;;  %p580_p2 = scmp.lt.u32.totalorder %s576_s6, %s690_s4 }
 0x2b3   :  { %p582_p3 = pnand %p580_p2, %p577_p1 }
 0x2b5   :  { %585 = shalt.err (!%p582_p3)
}
 0x2b6   :  { %s602_s11 = smov 128   ;;  %s603_s12 = smov 8  }
 0x2b7   :  { %375 = dma.vmem_to_hbm [thread:$0]  %s370_s26, 256, %s690_s4, [#allocation4], %s602_s11, %s602_s11, %s603_s12  }
 0x2b8   :  { %590 = dma.done.wait [#allocation4], 256  }
 0x2b9   :  { %591 = vsyncadd [#allocation4], 4294967040 }
 0x2ba   :  { %379 = vsyncpa [#allocation3], 1 }
 0x2bb   :  { %380 = vsyncpa [#allocation6], 1 }
 0x2bc   :  { %381 = vsyncpa [#allocation4], 1 }

// kernel: tpu_custom_call.1
= control target key start
LH: loop header
LB: loop body
LE: loop exit
PB: predicated region body
PF: predicated region fallthrough
CT: control target
= control target key end

     0   :  { %9 = vsyncpa [#allocation3], 0  ;;  %s686_s0 = inlined_call_operand.hbm [shape: f32[16,256], index: 0, kind: input, shape index: {}]   ;;  %s687_s1 = inlined_call_operand.hbm [shape: bf16[256,128], index: 1, kind: input, shape index: {}]   ;;  %s688_s2 = inlined_call_operand.vmem [shape: f32[1,128], index: 2, kind: input, shape index: {}]   ;;  %s689_s3 = inlined_call_operand.hbm [shape: bf16[128,128], index: 3, kind: input, shape index: {}]   ;;  %s690_s4 = inlined_call_operand.hbm [shape: f32[16,128], index: 4, kind: output, shape index: {}]  }
   0x1   :  { %10 = vsyncpa [#allocation6], 0 }
   0x2   :  { %11 = vsyncpa [#allocation4], 0  ;;  %s592_s15 = smov [#allocation5]   ;;  %s498_s19 = scalar_lea.hbm %s687_s1, 2048 }
   0x3   :  { %s29_s16 = sshll.u32 %s592_s15, 4  ;;  %p499_p0 = scmp.ne.s32.totalorder %s687_s1, %s498_s19  ;;  %s30_s16 = int_to_ptr.vmem [resolvable:$true] %s29_s16 }
   0x4   :  { %p502_p1 = scmp.lt.u32.totalorder %s498_s19, %s687_s1 }
   0x6   :  { %p504_p2 = pnand %p502_p1, %p499_p0 }
   0x8   :  { %507 = shalt.err (!%p504_p2)
}
   0x9   :  { %s508_s24 = scalar_lea.vmem %s30_s16, 2048  ;;  %p513_p4 = scmp.lt.s32.totalorder %s30_s16, %s30_s16 }
   0xa   :  { %p509_p3 = scmp.ne.s32.totalorder %s30_s16, %s508_s24  ;;  %p514_p5 = scmp.lt.s32.totalorder %s508_s24, %s508_s24 }
   0xc   :  { %p515_p6 = por %p514_p5, %p513_p4 }
   0xe   :  { %p516_p7 = pnand %p515_p6, %p509_p3 }
  0x10   :  { %519 = shalt.err (!%p516_p7)
}
  0x11   :  { %s593_s25 = smov 64   ;;  %s594_s26 = smov 4  }
  0x12   :  { %35 = dma.hbm_to_vmem [thread:$0]  %s687_s1, 2048, %s30_s16, [#allocation6], %s593_s25, %s593_s25, %s594_s26  }
  0x13   :  { %s595_s29 = smov [#allocation2]   ;;  %s520_s7 = scalar_lea.hbm %s686_s0, 512 }
  0x14   :  { %s17_s30 = sshll.u32 %s595_s29, 4  ;;  %p521_p8 = scmp.ne.s32.totalorder %s686_s0, %s520_s7  ;;  %s18_s30 = int_to_ptr.vmem [resolvable:$true] %s17_s30 }
  0x15   :  { %p524_p9 = scmp.lt.u32.totalorder %s520_s7, %s686_s0 }
  0x17   :  { %p526_p10 = pnand %p524_p9, %p521_p8 }
  0x19   :  { %529 = shalt.err (!%p526_p10)
}
  0x1a   :  { %s530_s12 = scalar_lea.vmem %s18_s30, 512  ;;  %p535_p12 = scmp.lt.s32.totalorder %s18_s30, %s18_s30 }
  0x1b   :  { %p531_p11 = scmp.ne.s32.totalorder %s18_s30, %s530_s12  ;;  %p536_p13 = scmp.lt.s32.totalorder %s530_s12, %s530_s12 }
  0x1d   :  { %p537_p0 = por %p536_p13, %p535_p12 }
  0x1f   :  { %p538_p1 = pnand %p537_p0, %p531_p11 }
  0x21   :  { %541 = shalt.err (!%p538_p1)
}
  0x22   :  { %s596_s1 = smov 256   ;;  %s597_s13 = smov 16  }
  0x23   :  { %23 = dma.hbm_to_vmem [thread:$0]  %s686_s0, 512, %s18_s30, [#allocation3], %s596_s1, %s596_s1, %s597_s13  }
  0x24   :  { %s598_s16 = smov [#allocation7]   ;;  %s542_s20 = scalar_lea.hbm %s689_s3, 1024 }
  0x25   :  { %s43_s17 = sshll.u32 %s598_s16, 4  ;;  %p543_p2 = scmp.ne.s32.totalorder %s689_s3, %s542_s20  ;;  %s44_s17 = int_to_ptr.vmem [resolvable:$true] %s43_s17 }
  0x26   :  { %p546_p3 = scmp.lt.u32.totalorder %s542_s20, %s689_s3 }
  0x28   :  { %p548_p4 = pnand %p546_p3, %p543_p2 }
  0x2a   :  { %551 = shalt.err (!%p548_p4)
}
  0x2b   :  { %s552_s27 = scalar_lea.vmem %s44_s17, 1024  ;;  %p557_p6 = scmp.lt.s32.totalorder %s44_s17, %s44_s17 }
  0x2c   :  { %p553_p5 = scmp.ne.s32.totalorder %s44_s17, %s552_s27  ;;  %p558_p7 = scmp.lt.s32.totalorder %s552_s27, %s552_s27 }
  0x2e   :  { %p559_p8 = por %p558_p7, %p557_p6 }
  0x30   :  { %p560_p9 = pnand %p559_p8, %p553_p5 }
  0x32   :  { %563 = shalt.err (!%p560_p9)
}
  0x33   :  { %49 = dma.hbm_to_vmem [thread:$0]  %s689_s3, 1024, %s44_s17, [#allocation6], %s593_s25, %s593_s25, %s594_s26  }
  0x34   :  { %586 = dma.done.wait [#allocation3], 512  }
  0x35   :  { %587 = vsyncadd [#allocation3], 4294966784 }
  0x36   :  { %588 = dma.done.wait [#allocation6], 3072  }
  0x37   :  { %589 = vsyncadd [#allocation6], 4294964224  ;;  %v470_v0 = vld [vmem:[#allocation5 + $0x40] sm:$0xff]   ;;  %v472_v2 = vld [vmem:[#allocation5 + $0x48] sm:$0xff]   ;;  %v599_v23 = vmov 0.0   ;;  %vm600_vm0 = vmmov 0  }
  0x38   :  { %v471_v1 = vld [vmem:[#allocation5] sm:$0xff]   ;;  %407 = vmatprep.subr.bf16.mxu0 %v470_v0  ;;  %v473_v3 = vld [vmem:[#allocation5 + $0x8] sm:$0xff]   ;;  %v474_v4 = vld [vmem:[#allocation5 + $0x50] sm:$0xff]   ;;  %438 = vmatprep.subr.bf16.mxu1 %v599_v23 }
  0x39   :  { %408 = vmatpush3.bf16.msra.mxu0 %v471_v1  ;;  %v475_v5 = vld [vmem:[#allocation5 + $0x10] sm:$0xff]   ;;  %v476_v6 = vld [vmem:[#allocation5 + $0x58] sm:$0xff]   ;;  %v478_v8 = vld [vmem:[#allocation5 + $0x60] sm:$0xff]   ;;  %454 = vmatprep.mubr.msk.bf16.mxu1 %vm600_vm0, %v599_v23 }
  0x3a   :  { %409 = vmatprep.subr.bf16.mxu0 %v472_v2  ;;  %v477_v7 = vld [vmem:[#allocation5 + $0x18] sm:$0xff]   ;;  %v479_v9 = vld [vmem:[#allocation5 + $0x20] sm:$0xff]   ;;  %v480_v10 = vld [vmem:[#allocation5 + $0x68] sm:$0xff]  }
  0x3b   :  { %v61_v11 = vld [vmem:[#allocation2 + $0x8] sm:$0xff]  ;;  %v63_v12 = vld [vmem:[#allocation2 + $0x18] sm:$0xff]  ;;  %v482_v15 = vld [vmem:[#allocation5 + $0x70] sm:$0xff]  }
  0x3c   :  { %v481_v13 = vld [vmem:[#allocation5 + $0x28] sm:$0xff]   ;;  %v65_v14 = vpack.c.bf16 %v63_v12, %v61_v11  ;;  %v483_v16 = vld [vmem:[#allocation5 + $0x30] sm:$0xff]   ;;  %v484_v17 = vld [vmem:[#allocation5 + $0x78] sm:$0xff]  }
  0x3d   :  { %410 = vmatpush3.bf16.msra.mxu0 %v473_v3  ;;  %v485_v18 = vld [vmem:[#allocation5 + $0x38] sm:$0xff]   ;;  %v60_v19 = vld [vmem:[#allocation2] sm:$0xff]  ;;  %v62_v20 = vld [vmem:[#allocation2 + $0x10] sm:$0xff] }
  0x3e   :  { %411 = vmatprep.subr.bf16.mxu0 %v474_v4  ;;  %233 = vmatprep.mubr.bf16.mxu0 %v65_v14  ;;  %v64_v21 = vpack.c.bf16 %v62_v20, %v60_v19  ;;  %v486_v22 = vld [vmem:[#allocation7] sm:$0xff]   ;;  %v487_v24 = vld [vmem:[#allocation7 + $0x8] sm:$0xff]   ;;  %v488_v25 = vld [vmem:[#allocation7 + $0x10] sm:$0xff]  }
  0x3f   :  { %439 = vmatpush3.bf16.msra.mxu1 %v486_v22  ;;  %v382_v28 = vld [vmem:[%s688_s2] ss:$0 sm:$0xff]  ;;  %v489_v39 = vld [vmem:[#allocation7 + $0x18] sm:$0xff]   ;;  %v491_v41 = vld [vmem:[#allocation7 + $0x28] sm:$0xff]   ;;  %s601_s2 = smov [#allocation8]  }
  0x40   :  { %440 = vmatprep.subr.bf16.mxu1 %v599_v23  ;;  %v490_v40 = vld [vmem:[#allocation7 + $0x20] sm:$0xff]   ;;  %v492_v42 = vld [vmem:[#allocation7 + $0x30] sm:$0xff]   ;;  %v493_v43 = vld [vmem:[#allocation7 + $0x38] sm:$0xff]   ;;  %s369_s26 = sshll.u32 %s601_s2, 4  ;;  %s370_s26 = int_to_ptr.vmem [resolvable:$true] %s369_s26 }
  0x41   :  { %412 = vmatpush3.bf16.msra.mxu0 %v475_v5  ;;  %s564_s29 = scalar_lea.vmem %s370_s26, 256  ;;  %p569_p11 = scmp.lt.s32.totalorder %s370_s26, %s370_s26 }
  0x42   :  { %413 = vmatprep.subr.bf16.mxu0 %v476_v6  ;;  %p565_p10 = scmp.ne.s32.totalorder %s370_s26, %s564_s29  ;;  %p570_p12 = scmp.lt.s32.totalorder %s564_s29, %s564_s29 }
  0x43   :  { %441 = vmatpush3.bf16.msra.mxu1 %v487_v24 }
  0x44   :  { %442 = vmatprep.subr.bf16.mxu1 %v599_v23  ;;  %p571_p13 = por %p570_p12, %p569_p11 }
  0x45   :  { %414 = vmatpush3.bf16.msra.mxu0 %v477_v7 }
  0x46   :  { %415 = vmatprep.subr.bf16.mxu0 %v478_v8  ;;  %p572_p0 = pnand %p571_p13, %p565_p10 }
  0x47   :  { %443 = vmatpush3.bf16.msra.mxu1 %v488_v25 }
  0x48   :  { %444 = vmatprep.subr.bf16.mxu1 %v599_v23 }
  0x49   :  { %416 = vmatpush3.bf16.msra.mxu0 %v479_v9 }
  0x4a   :  { %417 = vmatprep.subr.bf16.mxu0 %v480_v10 }
  0x4b   :  { %445 = vmatpush3.bf16.msra.mxu1 %v489_v39 }
  0x4c   :  { %446 = vmatprep.subr.bf16.mxu1 %v599_v23 }
  0x4d   :  { %418 = vmatpush3.bf16.msra.mxu0 %v481_v13 }
  0x4e   :  { %419 = vmatprep.subr.bf16.mxu0 %v482_v15 }
  0x4f   :  { %447 = vmatpush3.bf16.msra.mxu1 %v490_v40 }
  0x50   :  { %448 = vmatprep.subr.bf16.mxu1 %v599_v23 }
  0x51   :  { %420 = vmatpush3.bf16.msra.mxu0 %v483_v16 }
  0x52   :  { %421 = vmatprep.subr.bf16.mxu0 %v484_v17 }
  0x53   :  { %449 = vmatpush3.bf16.msra.mxu1 %v491_v41 }
  0x54   :  { %450 = vmatprep.subr.bf16.mxu1 %v599_v23 }
  0x55   :  { %422 = vmatpush3.bf16.msra.mxu0 %v485_v18 }
  0x57   :  { %451 = vmatpush3.bf16.msra.mxu1 %v492_v42 }
  0x58   :  { %234 = vmatmul.mubr.bf16.vlgmr.msra.gmra.mrb[0].mxu0 %v64_v21  ;;  %452 = vmatprep.subr.bf16.mxu1 %v599_v23 }
  0x5b   :  { %453 = vmatpush3.bf16.msra.mxu1 %v493_v43 }
 0x12b   :  { %v423_v26 = vpop.f32.mrb[0].mxu0 }
 0x12c   :  { %v424_v27 = vpop.f32.mrb[1].mxu0 }
 0x12d   :  { %v425_v29 = vadd.f32 %v424_v27, %v423_v26  ;;  %v426_v30 = vpop.f32.mrb[2].mxu0 }
 0x12e   :  { %v427_v31 = vpop.f32.mrb[3].mxu0 }
 0x12f   :  { %v428_v32 = vadd.f32 %v427_v31, %v426_v30  ;;  %v236_v33 = vadd.f32 %v425_v29, %v382_v28 }
 0x131   :  { %v239_v34 = vadd.f32 %v428_v32, %v382_v28  ;;  %v242_v35 = vmax.f32 %v236_v33, 0.0 }
 0x133   :  { %v243_v36 = vmax.f32 %v239_v34, 0.0  ;;  %v244_v37 = vmul.f32 %v242_v35, %v242_v35 }
 0x135   :  { %246 = vadd.xlane.f32.xlu0 %v244_v37  ;;  %v245_v38 = vmul.f32 %v243_v36, %v243_v36 }
 0x139   :  { %248 = vadd.xlane.f32.xlu0 %v245_v38 }
 0x1c2   :  { %v247_v44 = vpop.xlane.xlu0 %246 }
 0x1c3   :  { %v250_v45 = vmax.f32 %v247_v44, 1e-24 }
 0x1c5   :  { %494 = vrsqrt.f32 %v250_v45 }
 0x1c6   :  { %v249_v46 = vpop.xlane.xlu0 %248 }
 0x1c7   :  { %v251_v47 = vmax.f32 %v249_v46, 1e-24 }
 0x1c9   :  { %496 = vrsqrt.f32 %v251_v47 }
 0x1cf   :  { %v495_v48 = vpop.eup %494 }
 0x1d0   :  { %v254_v50 = vmul.f32 %v495_v48, %v242_v35 }
 0x1d3   :  { %v497_v49 = vpop.eup %496 }
 0x1d4   :  { %v255_v51 = vmul.f32 %v497_v49, %v243_v36 }
 0x1d6   :  { %v256_v52 = vpack.c.bf16 %v255_v51, %v254_v50 }
 0x1d8   :  { %455 = vmatmul.mubr.bf16.vlgmr.msra.gmra.mrb[0].mxu1 %v256_v52 }
 0x2ab   :  { %v355_v53 = vpop.f32.mrb[0].mxu1 }
 0x2ac   :  { %362 = vst [vmem:[#allocation8] sm:$0xff] %v355_v53  ;;  %v456_v54 = vpop.f32.mrb[1].mxu1 }
 0x2ad   :  { %v358_v55 = vpop.f32.mrb[2].mxu1 }
 0x2ae   :  { %363 = vst [vmem:[#allocation8 + $0x8] sm:$0xff] %v358_v55  ;;  %v457_v56 = vpop.f32.mrb[3].mxu1 }
 0x2af   :  { %575 = shalt.err (!%p572_p0)
}
 0x2b0   :  { %s576_s6 = scalar_lea.hbm %s690_s4, 256 }
 0x2b1   :  { %p577_p1 = scmp.ne.s32.totalorder %s690_s4, %s576_s6  ;;  %p580_p2 = scmp.lt.u32.totalorder %s576_s6, %s690_s4 }
 0x2b3   :  { %p582_p3 = pnand %p580_p2, %p577_p1 }
 0x2b5   :  { %585 = shalt.err (!%p582_p3)
}
 0x2b6   :  { %s602_s11 = smov 128   ;;  %s603_s12 = smov 8  }
 0x2b7   :  { %375 = dma.vmem_to_hbm [thread:$0]  %s370_s26, 256, %s690_s4, [#allocation4], %s602_s11, %s602_s11, %s603_s12  }
 0x2b8   :  { %590 = dma.done.wait [#allocation4], 256  }
 0x2b9   :  { %591 = vsyncadd [#allocation4], 4294967040 }
 0x2ba   :  { %379 = vsyncpa [#allocation3], 1 }
 0x2bb   :  { %380 = vsyncpa [#allocation6], 1 }
 0x2bc   :  { %381 = vsyncpa [#allocation4], 1 }

</bundles_post_ra>
